<compile_context>
chip_gen: v6e
topology: v6e:2x2x1
jax: 0.10.0
libtpu: 0.0.40
codegen_flags: <defaults>
</compile_context>

<pallas_src>
import math
from functools import partial

import jax
import jax.numpy as jnp
from jax.experimental import pallas as pl
from jax.experimental.pallas import tpu as pltpu


# --------------------------------------------------------------------------
# budgets / tile-size helpers
# --------------------------------------------------------------------------
def _vmem_budget_bytes():
    """Generation-aware scoped-VMEM limit (v7x: 64 MiB total, v5e/v6e: 128 MiB)."""
    cap = 0
    try:
        cap = int(getattr(pltpu.get_tpu_info(), "vmem_capacity_bytes", 0))
    except Exception:
        cap = 0
    if cap <= 0:
        cap = 64 * 1024 * 1024          # conservative: assume smallest (v7x)
    return max(32 * 1024 * 1024, min(int(cap * 0.75), 96 * 1024 * 1024))


def _pick_fold(m, w, max_cols):
    """Smallest k dividing m with (k*w) % 128 == 0 and k*w <= max_cols (lane density)."""
    if w % 128 == 0:
        return 1
    need = 128 // math.gcd(w, 128)
    k = need
    while k <= m and k * w <= max_cols:
        if m % k == 0:
            return k
        k += need
    return 1                            # fallback: correct, just not lane-dense


def _pick_lane_tile(d, target_elems):
    """Prefer full width (contiguous DMA rows); split only if it alone blows the budget."""
    if d <= target_elems or d % 128 != 0:
        # TODO(synk): huge non-multiple-of-128 D would need masked cdiv tiling.
        return d
    cap = max(128, (min(d, target_elems) // 128) * 128)
    t = cap
    while t >= 128:
        if d % t == 0:
            return t
        t -= 128
    return d


def _pick_row_tile(r, target_rows):
    """Row tile (multiple of 8). Returns (tr, r_padded); pad rows when no divisor fits."""
    target_rows = max(8, int(target_rows))
    if r <= target_rows:
        return r, r
    t = (target_rows // 8) * 8
    while t >= 8:
        if r % t == 0:
            return t, r
        t -= 8
    tr = (target_rows // 8) * 8
    r_pad = ((r + tr - 1) // tr) * tr   # zero-padded rows are stats-neutral
    return tr, r_pad


# --------------------------------------------------------------------------
# kernels
# --------------------------------------------------------------------------
def _bn_stats_kernel(x_ref, sum_ref, ssq_ref):
    # grid = (parts, D_tiles, R_tiles_per_part); last axis is the reduction axis.
    @pl.when(pl.program_id(2) == 0)
    def _():
        sum_ref[...] = jnp.zeros_like(sum_ref)
        ssq_ref[...] = jnp.zeros_like(ssq_ref)

    x = x_ref[...].astype(jnp.float32)                       # (TR, TD)
    sum_ref[...] += jnp.sum(x, axis=0, keepdims=True)
    ssq_ref[...] += jnp.sum(x * x, axis=0, keepdims=True)


def _bn_norm_kernel(x_ref, scale_ref, shift_ref, o_ref):
    x = x_ref[...].astype(jnp.float32)                       # (TR, TD)
    o_ref[...] = (x * scale_ref[...] + shift_ref[...]).astype(o_ref.dtype)


# --------------------------------------------------------------------------
# pallas_call wrappers
# --------------------------------------------------------------------------
def _stats(x2d, tr, td, parts, vmem_limit):
    R, D = x2d.shape
    rt = R // tr
    rt_per_part = rt // parts
    grid = (parts, D // td, rt_per_part)
    cost = pl.CostEstimate(flops=3 * R * D, transcendentals=0,
                           bytes_accessed=R * D * x2d.dtype.itemsize
                           + 2 * parts * D * 4)
    return pl.pallas_call(
        _bn_stats_kernel,
        out_shape=(jax.ShapeDtypeStruct((parts, D), jnp.float32),
                   jax.ShapeDtypeStruct((parts, D), jnp.float32)),
        grid_spec=pltpu.PrefetchScalarGridSpec(
            num_scalar_prefetch=0,
            grid=grid,
            in_specs=[pl.BlockSpec((tr, td),
                                   lambda p, d, r: (p * rt_per_part + r, d))],
            out_specs=[pl.BlockSpec((1, td), lambda p, d, r: (p, d)),
                       pl.BlockSpec((1, td), lambda p, d, r: (p, d))],
        ),
        compiler_params=pltpu.CompilerParams(
            dimension_semantics=("parallel", "parallel", "arbitrary"),
            vmem_limit_bytes=vmem_limit),
        cost_estimate=cost,
    )(x2d)


def _normalize(x2d, scale_cols, shift_cols, tr, td, vmem_limit):
    R, D = x2d.shape
    grid = (D // td, R // tr)
    cost = pl.CostEstimate(flops=2 * R * D, transcendentals=0,
                           bytes_accessed=2 * R * D * x2d.dtype.itemsize + 2 * D * 4)
    return pl.pallas_call(
        _bn_norm_kernel,
        out_shape=jax.ShapeDtypeStruct((R, D), x2d.dtype),
        grid_spec=pltpu.PrefetchScalarGridSpec(
            num_scalar_prefetch=0,
            grid=grid,
            in_specs=[pl.BlockSpec((tr, td), lambda d, r: (r, d)),
                      pl.BlockSpec((1, td), lambda d, r: (0, d)),
                      pl.BlockSpec((1, td), lambda d, r: (0, d))],
            out_specs=pl.BlockSpec((tr, td), lambda d, r: (r, d)),
        ),
        compiler_params=pltpu.CompilerParams(
            dimension_semantics=("parallel", "parallel"),
            vmem_limit_bytes=vmem_limit),
        cost_estimate=cost,
    )(x2d, scale_cols, shift_cols)


# --------------------------------------------------------------------------
# public functional forward
# --------------------------------------------------------------------------
def batch_norm1d(x, gamma, beta, eps=1e-5, block_bytes=None):
    """Functional forward of nn.BatchNorm1d (training mode).

    x: (N, C) or (N, C, L); gamma, beta: (C,).
    """
    if x.ndim == 2:
        N, C = x.shape
        L = 1
    elif x.ndim == 3:
        N, C, L = x.shape
    else:
        raise ValueError("BatchNorm1d expects 2D or 3D input")

    M, W = N, C * L
    vmem_limit = _vmem_budget_bytes()
    if block_bytes is None:
        block_bytes = max(1 << 20, min(8 << 20, vmem_limit // 6))   # ~4-8 MiB blocks
    itemsize = jnp.dtype(x.dtype).itemsize
    target_elems = max(1024, int(block_bytes) // itemsize)

    # Lane-dense row-fold:  (M, W) -> (R, D) with D % 128 == 0 when possible.
    k = _pick_fold(M, W, max_cols=target_elems)
    R, D = M // k, k * W
    xf = x.reshape(R, D)                                    # free, row-major

    td = _pick_lane_tile(D, target_elems)
    tr, r_pad = _pick_row_tile(R, max(8, target_elems // td))
    if r_pad != R:
        xf = jnp.pad(xf, ((0, r_pad - R), (0, 0)))          # zero rows: stats-neutral

    rt = r_pad // tr
    parts = 2 if (rt >= 2 and rt % 2 == 0) else 1           # megacore row-split (v7x)

    # ---- pass 1: per-column partial sums --------------------------------
    s, ssq = _stats(xf, tr, td, parts, vmem_limit)

    # ---- tiny (C,)-sized epilogue ---------------------------------------
    count = jnp.float32(N * L)
    sum_c = jnp.sum(s.reshape(parts * k, C, L), axis=(0, 2))
    ssq_c = jnp.sum(ssq.reshape(parts * k, C, L), axis=(0, 2))
    mean = sum_c / count
    var = jnp.maximum(ssq_c / count - mean * mean, 0.0)      # guard f32 cancellation
    inv_std = jax.lax.rsqrt(var + eps)
    scale_c = gamma.astype(jnp.float32) * inv_std
    shift_c = beta.astype(jnp.float32) - mean * scale_c
    # Pre-broadcast to the folded column layout: col = (n mod k)*C*L + c*L + l
    scale_cols = jnp.tile(jnp.repeat(scale_c, L), k).reshape(1, D)
    shift_cols = jnp.tile(jnp.repeat(shift_c, L), k).reshape(1, D)

    # ---- pass 2: normalize ----------------------------------------------
    y = _normalize(xf, scale_cols, shift_cols, tr, td, vmem_limit)
    y = y[:R]                                                # drop padded rows
    return y.reshape(x.shape)


# --------------------------------------------------------------------------
def _ref_bn(x, gamma, beta, eps):
    if x.ndim == 2:
        axes, gsh = (0,), (1, -1)
    else:
        axes, gsh = (0, 2), (1, -1, 1)
    mean = jnp.mean(x, axis=axes, keepdims=True)
    var = jnp.mean((x - mean) ** 2, axis=axes, keepdims=True)
    return (x - mean) / jnp.sqrt(var + eps) * gamma.reshape(gsh) + beta.reshape(gsh)


if __name__ == "__main__":
    key = jax.random.PRNGKey(0)
    k1, k2, k3, k4, k5, k6 = jax.random.split(key, 6)

    eps = 1e-5
    C = 32
    gamma = 1.0 + 0.1 * jax.random.normal(k2, (C,), dtype=jnp.float32)
    beta = 0.1 * jax.random.normal(k3, (C,), dtype=jnp.float32)

    bn = jax.jit(partial(batch_norm1d, eps=eps))

    # ---- 3-D input (N, C, L) --------------------------------------------
    N, L = 4, 16
    x3 = jax.random.normal(k1, (N, C, L), dtype=jnp.float32)
    out3 = jax.block_until_ready(bn(x3, gamma, beta))
    assert out3.shape == x3.shape
    assert jnp.max(jnp.abs(out3 - _ref_bn(x3, gamma, beta, eps))) < 1e-4, "3D mismatch"

    # ---- 2-D input (N, C) -----------------------------------------------
    x2 = jax.random.normal(k4, (16, C), dtype=jnp.float32)
    out2 = jax.block_until_ready(bn(x2, gamma, beta))
    assert out2.shape == x2.shape
    assert jnp.max(jnp.abs(out2 - _ref_bn(x2, gamma, beta, eps))) < 1e-4, "2D mismatch"

    # ---- multi-tile / megacore row-split path (forced small blocks) -----
    C2 = 48
    gamma2 = 1.0 + 0.1 * jax.random.normal(k2, (C2,), dtype=jnp.float32)
    beta2 = 0.1 * jax.random.normal(k3, (C2,), dtype=jnp.float32)
    bn_small = jax.jit(partial(batch_norm1d, eps=eps, block_bytes=4096))

    xa = jax.random.normal(k5, (256, C2), dtype=jnp.float32)     # folded, parts=2
    outa = jax.block_until_ready(bn_small(xa, gamma2, beta2))
    assert jnp.max(jnp.abs(outa - _ref_bn(xa, gamma2, beta2, eps))) < 1e-4, "tiled mismatch"

    xb = jax.random.normal(k6, (250, C2), dtype=jnp.float32)     # row-padding path
    outb = jax.block_until_ready(bn_small(xb, gamma2, beta2))
    assert outb.shape == xb.shape
    assert jnp.max(jnp.abs(outb - _ref_bn(xb, gamma2, beta2, eps))) < 1e-4, "padded mismatch"

    print("KERNEL_OK")
</pallas_src>

<mosaic_0001>
module attributes {stable_mosaic.version = 11 : i64} {
  func.func @_bn_stats_kernel(%arg0: i32, %arg1: i32, %arg2: i32, %arg3: memref<4x512xf32, #tpu.memory_space<vmem>>, %arg4: memref<1x512xf32, #tpu.memory_space<vmem>>, %arg5: memref<1x512xf32, #tpu.memory_space<vmem>>) attributes {dimension_semantics = [#tpu.dimension_semantics<parallel>, #tpu.dimension_semantics<parallel>, #tpu.dimension_semantics<arbitrary>], iteration_bounds = array<i64: 1, 1, 1>, scalar_prefetch = 0 : i64, scratch_operands = 0 : i64, tpu.core_type = #tpu.core_type<tc>, window_params = [{transform_indices = @transform_0, window_bounds = array<i64: 4, 512>}, {transform_indices = @transform_1, window_bounds = array<i64: 1, 512>}, {transform_indices = @transform_2, window_bounds = array<i64: 1, 512>}]} {
    %c0_i32 = arith.constant 0 : i32
    %0 = arith.cmpi eq, %arg2, %c0_i32 : i32
    %1 = arith.extui %0 : i1 to i32
    %c0_i32_0 = arith.constant 0 : i32
    %2 = arith.cmpi ne, %1, %c0_i32_0 : i32
    scf.if %2 {
      %cst_11 = arith.constant 0.000000e+00 : f32
      %15 = vector.broadcast %cst_11 : f32 to vector<1x512xf32>
      %c0_12 = arith.constant 0 : index
      %c0_13 = arith.constant 0 : index
      %16 = vector.load %arg4[%c0_12, %c0_13] : memref<1x512xf32, #tpu.memory_space<vmem>>, vector<1x512xf32>
      tpu.vector_store %arg4[%c0_12, %c0_13], %15 {strides = array<i32>} : memref<1x512xf32, #tpu.memory_space<vmem>>, vector<1x512xf32>,
      %cst_14 = arith.constant 0.000000e+00 : f32
      %17 = vector.broadcast %cst_14 : f32 to vector<1x512xf32>
      %c0_15 = arith.constant 0 : index
      %c0_16 = arith.constant 0 : index
      %18 = vector.load %arg5[%c0_15, %c0_16] : memref<1x512xf32, #tpu.memory_space<vmem>>, vector<1x512xf32>
      tpu.vector_store %arg5[%c0_15, %c0_16], %17 {strides = array<i32>} : memref<1x512xf32, #tpu.memory_space<vmem>>, vector<1x512xf32>,
    } else {
    }
    %c0 = arith.constant 0 : index
    %c0_1 = arith.constant 0 : index
    %3 = vector.load %arg3[%c0, %c0_1] : memref<4x512xf32, #tpu.memory_space<vmem>>, vector<4x512xf32>
    %c0_2 = arith.constant 0 : index
    %c0_3 = arith.constant 0 : index
    %4 = vector.load %arg4[%c0_2, %c0_3] : memref<1x512xf32, #tpu.memory_space<vmem>>, vector<1x512xf32>
    %cst = arith.constant dense<0.000000e+00> : vector<512xf32>
    %5 = vector.multi_reduction <add>, %3, %cst [0] : vector<4x512xf32> to vector<512xf32>
    %6 = vector.shape_cast %5 : vector<512xf32> to vector<1x512xf32>
    %7 = arith.addf %4, %6 : vector<1x512xf32>
    %c0_4 = arith.constant 0 : index
    %c0_5 = arith.constant 0 : index
    %8 = vector.load %arg4[%c0_4, %c0_5] : memref<1x512xf32, #tpu.memory_space<vmem>>, vector<1x512xf32>
    tpu.vector_store %arg4[%c0_4, %c0_5], %7 {strides = array<i32>} : memref<1x512xf32, #tpu.memory_space<vmem>>, vector<1x512xf32>,
    %c0_6 = arith.constant 0 : index
    %c0_7 = arith.constant 0 : index
    %9 = vector.load %arg5[%c0_6, %c0_7] : memref<1x512xf32, #tpu.memory_space<vmem>>, vector<1x512xf32>
    %10 = arith.mulf %3, %3 : vector<4x512xf32>
    %cst_8 = arith.constant dense<0.000000e+00> : vector<512xf32>
    %11 = vector.multi_reduction <add>, %10, %cst_8 [0] : vector<4x512xf32> to vector<512xf32>
    %12 = vector.shape_cast %11 : vector<512xf32> to vector<1x512xf32>
    %13 = arith.addf %9, %12 : vector<1x512xf32>
    %c0_9 = arith.constant 0 : index
    %c0_10 = arith.constant 0 : index
    %14 = vector.load %arg5[%c0_9, %c0_10] : memref<1x512xf32, #tpu.memory_space<vmem>>, vector<1x512xf32>
    tpu.vector_store %arg5[%c0_9, %c0_10], %13 {strides = array<i32>} : memref<1x512xf32, #tpu.memory_space<vmem>>, vector<1x512xf32>,
    return
  }
  func.func @transform_0(%arg0: i32, %arg1: i32, %arg2: i32) -> (i32, i32) {
    %c1_i32 = arith.constant 1 : i32
    %0 = arith.muli %arg0, %c1_i32 : i32
    %1 = arith.addi %0, %arg2 : i32
    %c0_i32 = arith.constant 0 : i32
    return %1, %arg1 : i32, i32
  }
  func.func @transform_1(%arg0: i32, %arg1: i32, %arg2: i32) -> (i32, i32) {
    %c0_i32 = arith.constant 0 : i32
    return %arg0, %arg1 : i32, i32
  }
  func.func @transform_2(%arg0: i32, %arg1: i32, %arg2: i32) -> (i32, i32) {
    %c0_i32 = arith.constant 0 : i32
    return %arg0, %arg1 : i32, i32
  }
}

module attributes {stable_mosaic.version = 11 : i64} {
  func.func @_bn_norm_kernel(%arg0: i32, %arg1: i32, %arg2: memref<4x512xf32, #tpu.memory_space<vmem>>, %arg3: memref<1x512xf32, #tpu.memory_space<vmem>>, %arg4: memref<1x512xf32, #tpu.memory_space<vmem>>, %arg5: memref<4x512xf32, #tpu.memory_space<vmem>>) attributes {dimension_semantics = [#tpu.dimension_semantics<parallel>, #tpu.dimension_semantics<parallel>], iteration_bounds = array<i64: 1, 1>, scalar_prefetch = 0 : i64, scratch_operands = 0 : i64, tpu.core_type = #tpu.core_type<tc>, window_params = [{transform_indices = @transform_0, window_bounds = array<i64: 4, 512>}, {transform_indices = @transform_1, window_bounds = array<i64: 1, 512>}, {transform_indices = @transform_2, window_bounds = array<i64: 1, 512>}, {transform_indices = @transform_3, window_bounds = array<i64: 4, 512>}]} {
    %c0 = arith.constant 0 : index
    %c0_0 = arith.constant 0 : index
    %0 = vector.load %arg2[%c0, %c0_0] : memref<4x512xf32, #tpu.memory_space<vmem>>, vector<4x512xf32>
    %c0_1 = arith.constant 0 : index
    %c0_2 = arith.constant 0 : index
    %1 = vector.load %arg3[%c0_1, %c0_2] : memref<1x512xf32, #tpu.memory_space<vmem>>, vector<1x512xf32>
    %2 = vector.broadcast %1 : vector<1x512xf32> to vector<4x512xf32>
    %3 = arith.mulf %0, %2 : vector<4x512xf32>
    %c0_3 = arith.constant 0 : index
    %c0_4 = arith.constant 0 : index
    %4 = vector.load %arg4[%c0_3, %c0_4] : memref<1x512xf32, #tpu.memory_space<vmem>>, vector<1x512xf32>
    %5 = vector.broadcast %4 : vector<1x512xf32> to vector<4x512xf32>
    %6 = arith.addf %3, %5 : vector<4x512xf32>
    %c0_5 = arith.constant 0 : index
    %c0_6 = arith.constant 0 : index
    %7 = vector.load %arg5[%c0_5, %c0_6] : memref<4x512xf32, #tpu.memory_space<vmem>>, vector<4x512xf32>
    tpu.vector_store %arg5[%c0_5, %c0_6], %6 {strides = array<i32>} : memref<4x512xf32, #tpu.memory_space<vmem>>, vector<4x512xf32>,
    return
  }
  func.func @transform_0(%arg0: i32, %arg1: i32) -> (i32, i32) {
    %c0_i32 = arith.constant 0 : i32
    return %arg1, %arg0 : i32, i32
  }
  func.func @transform_1(%arg0: i32, %arg1: i32) -> (i32, i32) {
    %c0_i32 = arith.constant 0 : i32
    %c0_i32_0 = arith.constant 0 : i32
    return %c0_i32, %arg0 : i32, i32
  }
  func.func @transform_2(%arg0: i32, %arg1: i32) -> (i32, i32) {
    %c0_i32 = arith.constant 0 : i32
    %c0_i32_0 = arith.constant 0 : i32
    return %c0_i32, %arg0 : i32, i32
  }
  func.func @transform_3(%arg0: i32, %arg1: i32) -> (i32, i32) {
    %c0_i32 = arith.constant 0 : i32
    return %arg1, %arg0 : i32, i32
  }
}

</mosaic_0001>

<bundles_post_ra>
// kernel: batch_norm1d.2
= control target key start
LH: loop header
LB: loop body
LE: loop exit
PB: predicated region body
PF: predicated region fallthrough
CT: control target
= control target key end

     0   :  { %v34_v0 = vlaneseq  ;;  %vm49_vm0 = vcmask 1043456   ;;  %v199_v3 = vmov 1966171168   ;;  %v200_v9 = vmov 0.0   ;;  %s260_s0 = inlined_call_operand.vmem [shape: f32[4,512], index: 0, kind: input, shape index: {}]   ;;  %s261_s1 = inlined_call_operand.vmem [shape: f32[1,512], index: 1, kind: output, shape index: {0}]   ;;  %s262_s2 = inlined_call_operand.vmem [shape: f32[1,512], index: 2, kind: output, shape index: {1}]  }
   0x1   :  { %v40_v1 = vld [vmem:[%s260_s0] sm:$0xff]  ;;  %v41_v2 = vld [vmem:[%s260_s0 + $0x8] sm:$0xff]  ;;  %v85_v4 = vunpack.c.l.s4 %v199_v3 }
   0x2   :  { %vm222_vm1 = vcmp.lt.s32.totalorder %v34_v0, 512  ;;  %v45_v6 = vcombine.high %v40_v1, %v40_v1  ;;  %v46_v7 = vcombine.high %v41_v2, %v41_v2  ;;  %v50_v8 = vsel %vm49_vm0, %v40_v1, 0.0 }
   0x3   :  { %38 = vst.msk [vmem:[%s261_s1] sm:$0xf] %vm222_vm1, %v200_v9  ;;  %v51_v10 = vrot.slane %v50_v8, 4  ;;  %v64_v11 = vsel %vm49_vm0, %v41_v2, 0.0  ;;  %39 = vst.msk [vmem:[%s262_s2] sm:$0xf] %vm222_vm1, %v200_v9  ;;  %v114_v15 = vmul.f32 %v40_v1, %v40_v1  ;;  %v86_v19 = vunpack.c.0.s8 %v85_v4 }
   0x4   :  { %v57_v12 = vsel %vm49_vm0, %v45_v6, 0.0  ;;  %v65_v13 = vrot.slane %v64_v11, 4  ;;  %v71_v14 = vsel %vm49_vm0, %v46_v7, 0.0  ;;  %v115_v21 = vmul.f32 %v41_v2, %v41_v2 }
   0x5   :  { %v52_v16 = vadd.f32 %v51_v10, %v50_v8  ;;  %v58_v17 = vrot.slane %v57_v12, 4  ;;  %v72_v18 = vrot.slane %v71_v14, 4  ;;  %v118_v22 = vcombine.high %v114_v15, %v114_v15 }
   0x6   :  { %v66_v20 = vadd.f32 %v65_v13, %v64_v11  ;;  %v122_v23 = vsel %vm49_vm0, %v114_v15, 0.0  ;;  %v119_v29 = vcombine.high %v115_v21, %v115_v21  ;;  %v136_v31 = vsel %vm49_vm0, %v115_v21, 0.0 }
   0x7   :  { %v53_v24 = vrot.slane %v52_v16, 2  ;;  %v59_v25 = vadd.f32 %v58_v17, %v57_v12  ;;  %v73_v26 = vadd.f32 %v72_v18, %v71_v14  ;;  %v123_v27 = vrot.slane %v122_v23, 4 }
   0x8   :  { %v67_v28 = vrot.slane %v66_v20, 2  ;;  %v129_v30 = vsel %vm49_vm0, %v118_v22, 0.0  ;;  %v88_v37 = vshrl.u32 %v34_v0, 7  ;;  %v137_v39 = vrot.slane %v136_v31, 4 }
   0x9   :  { %v54_v32 = vadd.f32 %v53_v24, %v52_v16  ;;  %v60_v33 = vrot.slane %v59_v25, 2  ;;  %v74_v34 = vrot.slane %v73_v26, 2  ;;  %v124_v35 = vadd.f32 %v123_v27, %v122_v23 }
   0xa   :  { %v68_v36 = vadd.f32 %v67_v28, %v66_v20  ;;  %v130_v38 = vrot.slane %v129_v30, 4  ;;  %v138_v46 = vadd.f32 %v137_v39, %v136_v31  ;;  %v143_v47 = vsel %vm49_vm0, %v119_v29, 0.0  ;;  %v42_v11 = vld [vmem:[%s261_s1] sm:$0xf] }
   0xb   :  { %v55_v40 = vrot.slane %v54_v32, 1  ;;  %v61_v41 = vadd.f32 %v60_v33, %v59_v25  ;;  %v75_v42 = vadd.f32 %v74_v34, %v73_v26  ;;  %v125_v43 = vrot.slane %v124_v35, 2  ;;  %v113_v22 = vld [vmem:[%s262_s2] sm:$0xf] }
   0xc   :  { %v69_v44 = vrot.slane %v68_v36, 1  ;;  %v131_v45 = vadd.f32 %v130_v38, %v129_v30  ;;  %v139_v54 = vrot.slane %v138_v46, 2  ;;  %v144_v55 = vrot.slane %v143_v47, 4 }
   0xd   :  { %v56_v48 = vadd.f32 %v55_v40, %v54_v32  ;;  %v62_v49 = vrot.slane %v61_v41, 1  ;;  %v76_v50 = vrot.slane %v75_v42, 1  ;;  %v126_v51 = vadd.f32 %v125_v43, %v124_v35 }
   0xe   :  { %v70_v52 = vadd.f32 %v69_v44, %v68_v36  ;;  %v132_v53 = vrot.slane %v131_v45, 2  ;;  %v89_v58 = vsub.s32 %v86_v19, %v88_v37  ;;  %v140_v61 = vadd.f32 %v139_v54, %v138_v46 }
   0xf   :  { %v63_v56 = vadd.f32 %v62_v49, %v61_v41  ;;  %v77_v57 = vadd.f32 %v76_v50, %v75_v42  ;;  %v127_v59 = vrot.slane %v126_v51, 1  ;;  %v145_v62 = vadd.f32 %v144_v55, %v143_v47 }
  0x10   :  { %v133_v60 = vadd.f32 %v132_v53, %v131_v45  ;;  %v141_v3 = vrot.slane %v140_v61, 1 }
  0x11   :  { %v82_v63 = vcombine.low %v56_v48, %v63_v56  ;;  %v83_v0 = vcombine.low %v70_v52, %v77_v57  ;;  %v128_v1 = vadd.f32 %v127_v59, %v126_v51  ;;  %v146_v4 = vrot.slane %v145_v62, 2 }
  0x12   :  { %v134_v2 = vrot.slane %v133_v60, 1  ;;  %v142_v12 = vadd.f32 %v141_v3, %v140_v61 }
  0x13   :  { %v90_v6 = vrot.slane %v82_v63, %v89_v58  ;;  %v97_v7 = vrot.slane %v83_v0, %v89_v58  ;;  %v147_v9 = vadd.f32 %v146_v4, %v145_v62 }
  0x14   :  { %v135_v8 = vadd.f32 %v134_v2, %v133_v60 }
  0x15   :  { %v98_v10 = vcombine.low %v90_v6, %v97_v7  ;;  %v148_v13 = vrot.slane %v147_v9, 1 }
  0x16   :  { %v154_v14 = vcombine.low %v128_v1, %v135_v8 }
  0x17   :  { %v105_v15 = vrot.slane %v98_v10, %v89_v58  ;;  %v149_v16 = vadd.f32 %v148_v13, %v147_v9 }
  0x18   :  { %v162_v19 = vrot.slane %v154_v14, %v89_v58 }
  0x19   :  { %v107_v17 = vadd.f32 %v105_v15, %v42_v11  ;;  %v155_v18 = vcombine.low %v142_v12, %v149_v16 }
  0x1b   :  { %112 = vst.msk [vmem:[%s261_s1] sm:$0xf] %vm222_vm1, %v107_v17  ;;  %v169_v20 = vrot.slane %v155_v18, %v89_v58 }
  0x1d   :  { %v170_v21 = vcombine.low %v162_v19, %v169_v20 }
  0x1f   :  { %v177_v23 = vrot.slane %v170_v21, %v89_v58 }
  0x21   :  { %v179_v24 = vadd.f32 %v177_v23, %v113_v22 }
  0x23   :  { %180 = vst.msk [vmem:[%s262_s2] sm:$0xf] %vm222_vm1, %v179_v24 }

// kernel: batch_norm1d.3
= control target key start
LH: loop header
LB: loop body
LE: loop exit
PB: predicated region body
PF: predicated region fallthrough
CT: control target
= control target key end

     0   :  { %v18_v0 = vlaneseq  ;;  %s108_s1 = inlined_call_operand.vmem [shape: f32[1,512], index: 1, kind: input, shape index: {}]   ;;  %s109_s2 = inlined_call_operand.vmem [shape: f32[1,512], index: 2, kind: input, shape index: {}]   ;;  %s110_s0 = inlined_call_operand.vmem [shape: f32[4,512], index: 0, kind: input, shape index: {}]   ;;  %s111_s3 = inlined_call_operand.vmem [shape: f32[4,512], index: 3, kind: output, shape index: {}]  }
   0x1   :  { %v16_v2 = vld [vmem:[%s108_s1] sm:$0xf]  ;;  %v15_v19 = vld [vmem:[%s110_s0 + $0x8] sm:$0xff] }
   0x2   :  { %v19_v1 = vshrl.u32 %v18_v0, 7  ;;  %v40_v3 = vld [vmem:[%s109_s2] sm:$0xf] }
   0x3   :  { %v14_v12 = vld [vmem:[%s110_s0] sm:$0xff] }
   0x4   :  { %v20_v4 = vsub.s32 0, %v19_v1  ;;  %v24_v5 = vsub.s32 1, %v19_v1  ;;  %v28_v6 = vsub.s32 2, %v19_v1  ;;  %v32_v7 = vsub.s32 3, %v19_v1 }
   0x6   :  { %v21_v8 = vrot.slane %v16_v2, %v20_v4  ;;  %v25_v9 = vrot.slane %v16_v2, %v24_v5  ;;  %v45_v10 = vrot.slane %v40_v3, %v20_v4  ;;  %v49_v11 = vrot.slane %v40_v3, %v24_v5 }
   0x7   :  { %v29_v13 = vrot.slane %v16_v2, %v28_v6  ;;  %v33_v14 = vrot.slane %v16_v2, %v32_v7  ;;  %v53_v15 = vrot.slane %v40_v3, %v28_v6  ;;  %v57_v16 = vrot.slane %v40_v3, %v32_v7 }
   0x8   :  { %v34_v17 = vcombine.low %v21_v8, %v25_v9  ;;  %v58_v18 = vcombine.low %v45_v10, %v49_v11 }
   0x9   :  { %v35_v20 = vcombine.low %v29_v13, %v33_v14  ;;  %v59_v21 = vcombine.low %v53_v15, %v57_v16 }
   0xa   :  { %v38_v22 = vmul.f32 %v34_v17, %v14_v12 }
   0xb   :  { %v39_v23 = vmul.f32 %v35_v20, %v15_v19 }
   0xc   :  { %v62_v24 = vadd.f32 %v58_v18, %v38_v22 }
   0xd   :  { %v63_v25 = vadd.f32 %v59_v21, %v39_v23 }
   0xe   :  { %64 = vst [vmem:[%s111_s3] sm:$0xff] %v62_v24 }
   0xf   :  { %65 = vst [vmem:[%s111_s3 + $0x8] sm:$0xff] %v63_v25 }

</bundles_post_ra>
